<compile_context>
chip_gen: v5e
topology: v5e:2x2
jax: 0.10.0
libtpu: 0.0.40
codegen_flags: <defaults>
</compile_context>

<pallas_src>
import math

import jax
import jax.numpy as jnp
from jax import lax
from jax.experimental import pallas as pl
from jax.experimental.pallas import tpu as pltpu


def _round_up(n, m):
    return ((n + m - 1) // m) * m


def _pad_lanes(n):
    return _round_up(max(n, 1), 128)


def _vmem_limit_bytes():
    # ~3/4 of physical VMEM: ~96 MiB on v5e/v6e (128 MiB), ~48 MiB on v7x (64 MiB).
    try:
        return int(pltpu.get_tpu_info().vmem_capacity_bytes * 3 // 4)
    except Exception:
        return 48 * 1024 * 1024


_VMEM_LIMIT = _vmem_limit_bytes()


def _gelu_exact(x):
    # PyTorch nn.GELU() default: exact erf-based GELU (f32).
    return 0.5 * x * (1.0 + lax.erf(x * 0.7071067811865476))


def _pad2(a, rows, cols):
    r, c = a.shape
    return jnp.pad(a, ((0, rows - r), (0, cols - c)))


# ----------------- core adapter: Linear -> GELU -> Linear (semantic path) ----------
def _core_adapter_kernel(x_ref, w1_ref, b1_ref, w2_ref, b2_ref, o_ref):
    cdt = w1_ref.dtype
    x = x_ref[...].astype(cdt)                                        # (TILE_N, C)
    h = _gelu_exact(jnp.dot(x, w1_ref[...], preferred_element_type=jnp.float32)
                    + b1_ref[...])
    y = (jnp.dot(h.astype(cdt), w2_ref[...], preferred_element_type=jnp.float32)
         + b2_ref[...])
    o_ref[...] = y.astype(o_ref.dtype)


def core_adapter(x, w1, b1, w2, b2, *, tile_n=2048):
    B, L, C = x.shape
    Ap = w1.shape[1]
    Cp = w2.shape[1]
    N = B * L
    tn = min(tile_n, _round_up(N, 8))          # >=8 sublanes; HBM-streaming tile
    grid = (pl.cdiv(N, tn),)
    out = pl.pallas_call(
        _core_adapter_kernel,
        out_shape=jax.ShapeDtypeStruct((N, Cp), x.dtype),
        grid=grid,
        in_specs=[
            pl.BlockSpec((tn, C), lambda i: (i, 0)),         # token stream (pipelined)
            pl.BlockSpec((C, Ap), lambda i: (0, 0)),         # weights: VMEM resident
            pl.BlockSpec((1, Ap), lambda i: (0, 0)),
            pl.BlockSpec((Ap, Cp), lambda i: (0, 0)),
            pl.BlockSpec((1, Cp), lambda i: (0, 0)),
        ],
        out_specs=pl.BlockSpec((tn, Cp), lambda i: (i, 0)),
        compiler_params=pltpu.CompilerParams(
            dimension_semantics=("parallel",),
            vmem_limit_bytes=_VMEM_LIMIT),
        cost_estimate=pl.CostEstimate(
            flops=2 * N * (C * Ap + Ap * Cp),
            transcendentals=N * Ap,
            bytes_accessed=int(x.dtype.itemsize) * N * (C + Cp)
                           + int(w1.dtype.itemsize) * (C * Ap + Ap * Cp)),
    )(x.reshape(N, C), w1, b1, w2, b2)
    return out.reshape(B, L, Cp)[..., :C]


# --------- temporal path: core adapter + single-head self-attention (fused) --------
def _temporal_kernel(x_ref, w1_ref, b1_ref, w2_ref, b2_ref,
                     wqkv_ref, bqkv_ref, wo_ref, bo_ref, o_ref):
    Bt, L, C = x_ref.shape
    Cp = w2_ref.shape[1]
    cdt = w1_ref.dtype

    x2 = x_ref[...].reshape(Bt * L, C).astype(cdt)
    h = _gelu_exact(jnp.dot(x2, w1_ref[...], preferred_element_type=jnp.float32)
                    + b1_ref[...])
    y = (jnp.dot(h.astype(cdt), w2_ref[...], preferred_element_type=jnp.float32)
         + b2_ref[...])
    # fused QKV; the 1/sqrt(E) softmax scale is folded into the Q columns/bias.
    qkv = (jnp.dot(y.astype(cdt), wqkv_ref[...], preferred_element_type=jnp.float32)
           + bqkv_ref[...]).reshape(Bt, L, 3 * Cp)
    q = qkv[..., :Cp].astype(cdt)
    k = qkv[..., Cp:2 * Cp].astype(cdt)
    v = qkv[..., 2 * Cp:].astype(cdt)

    s = jnp.einsum('bqd,bkd->bqk', q, k, preferred_element_type=jnp.float32)
    s = s - jnp.max(s, axis=-1, keepdims=True)
    p = jnp.exp(s)
    p = p / jnp.sum(p, axis=-1, keepdims=True)     # exact reciprocal (bf16-safe)
    a = jnp.einsum('bqk,bkd->bqd', p.astype(cdt), v,
                   preferred_element_type=jnp.float32)

    out = (jnp.dot(a.reshape(Bt * L, Cp).astype(cdt), wo_ref[...],
                   preferred_element_type=jnp.float32) + bo_ref[...])
    o_ref[...] = out.reshape(Bt, L, Cp).astype(o_ref.dtype)


def temporal_adapter(x, w1, b1, w2, b2, wqkv, bqkv, wo, bo, *, batch_tile=8):
    B, L, C = x.shape
    Ap = w1.shape[1]
    Cp = w2.shape[1]
    Bt = max(1, min(batch_tile, B))
    grid = (pl.cdiv(B, Bt),)
    # TODO(synk): for long sequences, tile the KV dim with an online-softmax (flash)
    # accumulator so the (Bt, L, L) f32 score block stays inside VMEM.
    flops = 2 * B * L * (C * Ap + Ap * Cp + 3 * Cp * Cp + 2 * L * Cp + Cp * Cp)
    out = pl.pallas_call(
        _temporal_kernel,
        out_shape=jax.ShapeDtypeStruct((B, L, Cp), x.dtype),
        grid=grid,
        in_specs=[
            pl.BlockSpec((Bt, L, C), lambda b: (b, 0, 0)),   # batch tile (pipelined)
            pl.BlockSpec((C, Ap), lambda b: (0, 0)),          # weights: resident
            pl.BlockSpec((1, Ap), lambda b: (0, 0)),
            pl.BlockSpec((Ap, Cp), lambda b: (0, 0)),
            pl.BlockSpec((1, Cp), lambda b: (0, 0)),
            pl.BlockSpec((Cp, 3 * Cp), lambda b: (0, 0)),
            pl.BlockSpec((1, 3 * Cp), lambda b: (0, 0)),
            pl.BlockSpec((Cp, Cp), lambda b: (0, 0)),
            pl.BlockSpec((1, Cp), lambda b: (0, 0)),
        ],
        out_specs=pl.BlockSpec((Bt, L, Cp), lambda b: (b, 0, 0)),
        compiler_params=pltpu.CompilerParams(
            dimension_semantics=("parallel",),
            vmem_limit_bytes=_VMEM_LIMIT),
        cost_estimate=pl.CostEstimate(
            flops=flops,
            transcendentals=B * L * (Ap + L),
            bytes_accessed=int(x.dtype.itemsize) * B * L * (C + Cp)
                           + int(w1.dtype.itemsize) * (C * Ap + Ap * Cp + 4 * Cp * Cp)),
    )(x, w1, b1, w2, b2, wqkv, bqkv, wo, bo)
    return out[..., :C]


# ----------- syntax path: core adapter + LSTM + output projection (fused) ----------
def _syntax_kernel(x_ref, w1_ref, b1_ref, w2_ref, b2_ref,
                   wih_ref, whh_ref, bg_ref, wp_ref, bp_ref, o_ref,
                   xg_ref, hs_ref):
    # x_ref: (Bt, L, C) batch-major; gate columns ordered [i, f, o, g] (lane-padded).
    # xg_ref: (L, Bt, 4Hp) time-major scratch; hs_ref: (L, Bt, Hp) time-major scratch.
    Bt, L, C = x_ref.shape
    Hp = whh_ref.shape[0]
    Cp = wp_ref.shape[1]
    cdt = w1_ref.dtype

    # ---- stage 1 (token-parallel): core adapter + input-gate precompute ------------
    xt = jnp.swapaxes(x_ref[...], 0, 1).reshape(L * Bt, C).astype(cdt)  # time-major
    h1 = _gelu_exact(jnp.dot(xt, w1_ref[...], preferred_element_type=jnp.float32)
                     + b1_ref[...])
    y = (jnp.dot(h1.astype(cdt), w2_ref[...], preferred_element_type=jnp.float32)
         + b2_ref[...])
    xg = (jnp.dot(y.astype(cdt), wih_ref[...], preferred_element_type=jnp.float32)
          + bg_ref[...])
    xg_ref[...] = xg.reshape(L, Bt, 4 * Hp)          # single contiguous store

    # ---- stage 2 (time-serial): LSTM recurrence, gates ordered [i, f, o, g] --------
    # whh stays VMEM-resident and is read inside the step (not hoisted into vregs).
    # TODO(synk): stage whh on the MXU across timesteps via pltpu.matmul_push_rhs /
    # matmul_acc_lhs / matmul_pop to avoid re-feeding the RHS every step.
    def step(t, carry):
        h, c = carry
        g = xg_ref[t] + jnp.dot(h.astype(cdt), whh_ref[...],
                                preferred_element_type=jnp.float32)   # (Bt, 4Hp)
        sg = jax.nn.sigmoid(g[:, :3 * Hp])            # one wide sigmoid: i, f, o
        i_g = sg[:, 0:Hp]
        f_g = sg[:, Hp:2 * Hp]
        o_g = sg[:, 2 * Hp:3 * Hp]
        g_g = jnp.tanh(g[:, 3 * Hp:])
        c_new = f_g * c + i_g * g_g
        h_new = o_g * jnp.tanh(c_new)
        hs_ref[t] = h_new
        return h_new, c_new

    h0 = jnp.zeros((Bt, Hp), jnp.float32)
    c0 = jnp.zeros((Bt, Hp), jnp.float32)
    lax.fori_loop(0, L, step, (h0, c0), unroll=True if L <= 32 else 8)

    # ---- stage 3 (token-parallel): output projection, single batch-major store -----
    hs = hs_ref[...].reshape(L * Bt, Hp).astype(cdt)
    out = (jnp.dot(hs, wp_ref[...], preferred_element_type=jnp.float32)
           + bp_ref[...]).reshape(L, Bt, Cp)
    o_ref[...] = jnp.swapaxes(out, 0, 1).astype(o_ref.dtype)


def syntax_adapter(x, w1, b1, w2, b2, wih, whh, bg, wp, bp, *, batch_tile=8):
    B, L, C = x.shape
    Ap = w1.shape[1]
    Cp = w2.shape[1]
    Hp = whh.shape[0]
    Bt = max(1, min(batch_tile, B))                    # >=8 preferred to fill sublanes
    grid = (pl.cdiv(B, Bt),)
    flops = 2 * B * L * (C * Ap + Ap * Cp + Cp * 4 * Hp + Hp * 4 * Hp + Hp * Cp)
    out = pl.pallas_call(
        _syntax_kernel,
        out_shape=jax.ShapeDtypeStruct((B, L, Cp), x.dtype),
        grid=grid,
        in_specs=[
            pl.BlockSpec((Bt, L, C), lambda b: (b, 0, 0)),   # batch tile (pipelined)
            pl.BlockSpec((C, Ap), lambda b: (0, 0)),          # weights: resident
            pl.BlockSpec((1, Ap), lambda b: (0, 0)),
            pl.BlockSpec((Ap, Cp), lambda b: (0, 0)),
            pl.BlockSpec((1, Cp), lambda b: (0, 0)),
            pl.BlockSpec((Cp, 4 * Hp), lambda b: (0, 0)),
            pl.BlockSpec((Hp, 4 * Hp), lambda b: (0, 0)),
            pl.BlockSpec((1, 4 * Hp), lambda b: (0, 0)),
            pl.BlockSpec((Hp, Cp), lambda b: (0, 0)),
            pl.BlockSpec((1, Cp), lambda b: (0, 0)),
        ],
        out_specs=pl.BlockSpec((Bt, L, Cp), lambda b: (b, 0, 0)),
        scratch_shapes=[pltpu.VMEM((L, Bt, 4 * Hp), jnp.float32),
                        pltpu.VMEM((L, Bt, Hp), jnp.float32)],
        compiler_params=pltpu.CompilerParams(
            dimension_semantics=("parallel",),
            vmem_limit_bytes=_VMEM_LIMIT),
        cost_estimate=pl.CostEstimate(
            flops=flops,
            transcendentals=B * L * (Ap + 5 * Hp),
            bytes_accessed=int(x.dtype.itemsize) * B * L * (C + Cp)
                           + int(w1.dtype.itemsize) * (C * Ap + Ap * Cp + Cp * 4 * Hp
                                                       + Hp * 4 * Hp + Hp * Cp)),
    )(x, w1, b1, w2, b2, wih, whh, bg, wp, bp)
    return out[..., :C]


# ------------------------------ module wrapper --------------------------------------
class ExpertAdapterPallas:
    def __init__(self, in_channels, adapter_channels, expertise='semantic',
                 seed=0, param_dtype=jnp.bfloat16):
        self.expertise = expertise
        self.param_dtype = param_dtype
        C, A = in_channels, adapter_channels
        Cp, Ap = _pad_lanes(C), _pad_lanes(A)
        self.C, self.A, self.Cp, self.Ap = C, A, Cp, Ap
        ks = jax.random.split(jax.random.PRNGKey(seed), 16)

        def init(k, shape, scale=0.1):
            return (scale * jax.random.normal(k, shape)).astype(jnp.float32)

        wdt = param_dtype
        # core_adapter: Linear(C->A), GELU, Linear(A->C)  (weights stored (in, out))
        self.w1, self.b1 = init(ks[0], (C, A)), init(ks[1], (A,))
        self.w2, self.b2 = init(ks[2], (A, C)), init(ks[3], (C,))
        # lane-padded kernel copies: weights in param_dtype, biases in f32
        self._w1 = _pad2(self.w1, C, Ap).astype(wdt)
        self._b1 = _pad2(self.b1.reshape(1, A), 1, Ap)
        self._w2 = _pad2(self.w2, Ap, Cp).astype(wdt)
        self._b2 = _pad2(self.b2.reshape(1, C), 1, Cp)

        if expertise == 'temporal':
            # nn.MultiheadAttention(embed_dim=C, num_heads=1, batch_first=True)
            self.wq, self.wk, self.wv = (init(ks[4], (C, C)), init(ks[5], (C, C)),
                                         init(ks[6], (C, C)))
            self.bq, self.bk, self.bv = (init(ks[7], (C,)), init(ks[8], (C,)),
                                         init(ks[9], (C,)))
            self.wo, self.bo = init(ks[10], (C, C)), init(ks[11], (C,))
            scale = 1.0 / math.sqrt(C)
            # Fused QKV weight, each block lane-padded; softmax scale folded into Q.
            self._wqkv = jnp.concatenate(
                [_pad2(self.wq * scale, Cp, Cp), _pad2(self.wk, Cp, Cp),
                 _pad2(self.wv, Cp, Cp)], axis=1).astype(wdt)
            self._bqkv = jnp.concatenate(
                [_pad2((self.bq * scale).reshape(1, C), 1, Cp),
                 _pad2(self.bk.reshape(1, C), 1, Cp),
                 _pad2(self.bv.reshape(1, C), 1, Cp)], axis=1)
            self._wo = _pad2(self.wo, Cp, Cp).astype(wdt)
            self._bo = _pad2(self.bo.reshape(1, C), 1, Cp)
        elif expertise == 'syntax':
            # nn.LSTM(input_size=C, hidden_size=A, batch_first=True); gates i,f,g,o
            H, Hp = A, Ap
            self.wih, self.whh = init(ks[4], (C, 4 * H)), init(ks[5], (H, 4 * H))
            self.bih, self.bhh = init(ks[6], (4 * H,)), init(ks[7], (4 * H,))
            # nn.Linear(A, C)
            self.wp, self.bp = init(ks[8], (H, C)), init(ks[9], (C,))

            def reorder_pad_gates(w):
                # gate cols [i, f, g, o] -> [i, f, o, g]; each gate lane-padded to Hp
                i, f, g, o = (w[..., :H], w[..., H:2 * H],
                              w[..., 2 * H:3 * H], w[..., 3 * H:])
                pad = lambda a: jnp.pad(a, [(0, 0)] * (a.ndim - 1) + [(0, Hp - H)])
                return jnp.concatenate([pad(i), pad(f), pad(o), pad(g)], axis=-1)

            self._wih = _pad2(reorder_pad_gates(self.wih), Cp, 4 * Hp).astype(wdt)
            self._whh = _pad2(reorder_pad_gates(self.whh), Hp, 4 * Hp).astype(wdt)
            self._bg = reorder_pad_gates((self.bih + self.bhh).reshape(1, 4 * H))
            self._wp = _pad2(self.wp, Hp, Cp).astype(wdt)
            self._bp = _pad2(self.bp.reshape(1, C), 1, Cp)

    def __call__(self, x):
        if self.expertise == 'temporal':
            return temporal_adapter(x, self._w1, self._b1, self._w2, self._b2,
                                    self._wqkv, self._bqkv, self._wo, self._bo)
        if self.expertise == 'syntax':
            return syntax_adapter(x, self._w1, self._b1, self._w2, self._b2,
                                  self._wih, self._whh, self._bg, self._wp, self._bp)
        return core_adapter(x, self._w1, self._b1, self._w2, self._b2)


# ---------------------------- pure-JAX reference -------------------------------------
def _ref_forward(m, x):
    y = _gelu_exact(x @ m.w1 + m.b1) @ m.w2 + m.b2
    if m.expertise == 'temporal':
        E = y.shape[-1]
        q, k, v = y @ m.wq + m.bq, y @ m.wk + m.bk, y @ m.wv + m.bv
        s = jnp.einsum('bqe,bke->bqk', q, k) / math.sqrt(E)
        p = jax.nn.softmax(s, axis=-1)
        a = jnp.einsum('bqk,bke->bqe', p, v)
        y = a @ m.wo + m.bo
    elif m.expertise == 'syntax':
        B, L, C = y.shape
        H = m.whh.shape[0]

        def step(carry, x_t):
            h, c = carry
            g = x_t @ m.wih + h @ m.whh + m.bih + m.bhh
            i = jax.nn.sigmoid(g[:, :H]); f = jax.nn.sigmoid(g[:, H:2 * H])
            gg = jnp.tanh(g[:, 2 * H:3 * H]); o = jax.nn.sigmoid(g[:, 3 * H:])
            c = f * c + i * gg
            h = o * jnp.tanh(c)
            return (h, c), h

        xt = jnp.transpose(y, (1, 0, 2))
        _, hs = lax.scan(step, (jnp.zeros((B, H)), jnp.zeros((B, H))), xt)
        y = jnp.transpose(hs, (1, 0, 2)) @ m.wp + m.bp
    return y


if __name__ == "__main__":
    B, L, C, A = 2, 8, 32, 16
    x = jax.random.normal(jax.random.PRNGKey(0), (B, L, C), dtype=jnp.float32)

    for expertise in ("semantic", "temporal", "syntax"):
        for pdt, tol in ((jnp.float32, 2e-3), (jnp.bfloat16, 2e-2)):
            adapter = ExpertAdapterPallas(C, A, expertise=expertise, seed=42,
                                          param_dtype=pdt)
            out = adapter(x)
            jax.block_until_ready(out)
            assert out.shape == (B, L, C), (expertise, pdt, out.shape)
            ref = _ref_forward(adapter, x)
            assert jnp.allclose(out, ref, atol=tol, rtol=tol), (expertise, pdt)

    print("KERNEL_OK")
</pallas_src>

<mosaic_0001>
module attributes {stable_mosaic.version = 11 : i64} {
  func.func @_core_adapter_kernel(%arg0: i32, %arg1: memref<16x32xf32, #tpu.memory_space<vmem>>, %arg2: memref<32x128xf32, #tpu.memory_space<vmem>>, %arg3: memref<1x128xf32, #tpu.memory_space<vmem>>, %arg4: memref<128x128xf32, #tpu.memory_space<vmem>>, %arg5: memref<1x128xf32, #tpu.memory_space<vmem>>, %arg6: memref<16x128xf32, #tpu.memory_space<vmem>>) attributes {dimension_semantics = [#tpu.dimension_semantics<parallel>], iteration_bounds = array<i64: 1>, scalar_prefetch = 0 : i64, scratch_operands = 0 : i64, tpu.core_type = #tpu.core_type<tc>, window_params = [{transform_indices = @transform_0, window_bounds = array<i64: 16, 32>}, {pipeline_mode = #tpu.pipeline_mode<synchronous>, transform_indices = @transform_1, window_bounds = array<i64: 32, 128>}, {pipeline_mode = #tpu.pipeline_mode<synchronous>, transform_indices = @transform_2, window_bounds = array<i64: 1, 128>}, {pipeline_mode = #tpu.pipeline_mode<synchronous>, transform_indices = @transform_3, window_bounds = array<i64: 128, 128>}, {pipeline_mode = #tpu.pipeline_mode<synchronous>, transform_indices = @transform_4, window_bounds = array<i64: 1, 128>}, {transform_indices = @transform_5, window_bounds = array<i64: 16, 128>}]} {
    %c0 = arith.constant 0 : index
    %c0_0 = arith.constant 0 : index
    %0 = vector.load %arg1[%c0, %c0_0] : memref<16x32xf32, #tpu.memory_space<vmem>>, vector<16x32xf32>
    %c0_1 = arith.constant 0 : index
    %c0_2 = arith.constant 0 : index
    %1 = vector.load %arg2[%c0_1, %c0_2] : memref<32x128xf32, #tpu.memory_space<vmem>>, vector<32x128xf32>
    %cst = arith.constant dense<0.000000e+00> : vector<16x128xf32>
    %2 = tpu.matmul %0, %1, %cst {dimension_numbers = #tpu.dot_dimension_numbers<[1], [0], [0], [1], [0, 0, 1, 1], [], []>} : vector<16x32xf32>, vector<32x128xf32>, vector<16x128xf32> -> vector<16x128xf32>
    %c0_3 = arith.constant 0 : index
    %c0_4 = arith.constant 0 : index
    %3 = vector.load %arg3[%c0_3, %c0_4] : memref<1x128xf32, #tpu.memory_space<vmem>>, vector<1x128xf32>
    %4 = vector.broadcast %3 : vector<1x128xf32> to vector<16x128xf32>
    %5 = arith.addf %2, %4 : vector<16x128xf32>
    %cst_5 = arith.constant 5.000000e-01 : f32
    %6 = vector.broadcast %cst_5 : f32 to vector<16x128xf32>
    %7 = arith.mulf %6, %5 : vector<16x128xf32>
    %cst_6 = arith.constant 0.707106769 : f32
    %8 = vector.broadcast %cst_6 : f32 to vector<16x128xf32>
    %9 = arith.mulf %5, %8 : vector<16x128xf32>
    %10 = math.erf %9 : vector<16x128xf32>
    %cst_7 = arith.constant 1.000000e+00 : f32
    %11 = vector.broadcast %cst_7 : f32 to vector<16x128xf32>
    %12 = arith.addf %11, %10 : vector<16x128xf32>
    %13 = arith.mulf %7, %12 : vector<16x128xf32>
    %c0_8 = arith.constant 0 : index
    %c0_9 = arith.constant 0 : index
    %14 = vector.load %arg4[%c0_8, %c0_9] : memref<128x128xf32, #tpu.memory_space<vmem>>, vector<128x128xf32>
    %cst_10 = arith.constant dense<0.000000e+00> : vector<16x128xf32>
    %15 = tpu.matmul %13, %14, %cst_10 {dimension_numbers = #tpu.dot_dimension_numbers<[1], [0], [0], [1], [0, 0, 1, 1], [], []>} : vector<16x128xf32>, vector<128x128xf32>, vector<16x128xf32> -> vector<16x128xf32>
    %c0_11 = arith.constant 0 : index
    %c0_12 = arith.constant 0 : index
    %16 = vector.load %arg5[%c0_11, %c0_12] : memref<1x128xf32, #tpu.memory_space<vmem>>, vector<1x128xf32>
    %17 = vector.broadcast %16 : vector<1x128xf32> to vector<16x128xf32>
    %18 = arith.addf %15, %17 : vector<16x128xf32>
    %c0_13 = arith.constant 0 : index
    %c0_14 = arith.constant 0 : index
    %19 = vector.load %arg6[%c0_13, %c0_14] : memref<16x128xf32, #tpu.memory_space<vmem>>, vector<16x128xf32>
    tpu.vector_store %arg6[%c0_13, %c0_14], %18 {strides = array<i32>} : memref<16x128xf32, #tpu.memory_space<vmem>>, vector<16x128xf32>,
    return
  }
  func.func @transform_0(%arg0: i32) -> (i32, i32) {
    %c0_i32 = arith.constant 0 : i32
    %c0_i32_0 = arith.constant 0 : i32
    return %arg0, %c0_i32 : i32, i32
  }
  func.func @transform_1(%arg0: i32) -> (i32, i32) {
    %c0_i32 = arith.constant 0 : i32
    %c0_i32_0 = arith.constant 0 : i32
    %c0_i32_1 = arith.constant 0 : i32
    return %c0_i32, %c0_i32_0 : i32, i32
  }
  func.func @transform_2(%arg0: i32) -> (i32, i32) {
    %c0_i32 = arith.constant 0 : i32
    %c0_i32_0 = arith.constant 0 : i32
    %c0_i32_1 = arith.constant 0 : i32
    return %c0_i32, %c0_i32_0 : i32, i32
  }
  func.func @transform_3(%arg0: i32) -> (i32, i32) {
    %c0_i32 = arith.constant 0 : i32
    %c0_i32_0 = arith.constant 0 : i32
    %c0_i32_1 = arith.constant 0 : i32
    return %c0_i32, %c0_i32_0 : i32, i32
  }
  func.func @transform_4(%arg0: i32) -> (i32, i32) {
    %c0_i32 = arith.constant 0 : i32
    %c0_i32_0 = arith.constant 0 : i32
    %c0_i32_1 = arith.constant 0 : i32
    return %c0_i32, %c0_i32_0 : i32, i32
  }
  func.func @transform_5(%arg0: i32) -> (i32, i32) {
    %c0_i32 = arith.constant 0 : i32
    %c0_i32_0 = arith.constant 0 : i32
    return %arg0, %c0_i32 : i32, i32
  }
}

</mosaic_0001>

<bundles_post_ra>
// kernel: tpu_custom_call.1
= control target key start
LH: loop header
LB: loop body
LE: loop exit
PB: predicated region body
PF: predicated region fallthrough
CT: control target
= control target key end

     0   :  { %10 = vsyncpa [#allocation3], 0  ;;  %s491_s0 = inlined_call_operand.hbm [shape: f32[16,32], index: 0, kind: input, shape index: {}]   ;;  %s492_s1 = inlined_call_operand.hbm [shape: f32[32,128], index: 1, kind: input, shape index: {}]   ;;  %s493_s2 = inlined_call_operand.vmem [shape: f32[1,128], index: 2, kind: input, shape index: {}]   ;;  %s494_s3 = inlined_call_operand.hbm [shape: f32[128,128], index: 3, kind: input, shape index: {}]   ;;  %s495_s4 = inlined_call_operand.vmem [shape: f32[1,128], index: 4, kind: input, shape index: {}]   ;;  %s496_s5 = inlined_call_operand.hbm [shape: f32[16,128], index: 5, kind: output, shape index: {}]  }
   0x1   :  { %11 = vsyncpa [#allocation6], 0 }
   0x2   :  { %12 = vsyncpa [#allocation4], 0  ;;  %s30_s20 = sshll.u32 %s492_s1, 4  ;;  %s395_s21 = smov [#allocation5]   ;;  %s31_s20 = int_to_ptr.hbm [resolvable:$true] %s30_s20 }
   0x3   :  { %s32_s22 = sshll.u32 %s395_s21, 4  ;;  %s17_s25 = sshll.u32 %s491_s0, 4  ;;  %s33_s22 = int_to_ptr.vmem [resolvable:$true] %s32_s22  ;;  %s18_s25 = int_to_ptr.hbm [resolvable:$true] %s17_s25 }
   0x4   :  { %s396_s26 = smov 128   ;;  %s397_s27 = smov 8  }
   0x5   :  { %38 = dma.hbm_to_vmem [thread:$0]  %s31_s20, 512, %s33_s22, [#allocation6], %s396_s26, %s396_s26, %s397_s27  }
   0x6   :  { %s398_s28 = smov [#allocation2]   ;;  %s45_s1 = sshll.u32 %s494_s3, 4  ;;  %s46_s1 = int_to_ptr.hbm [resolvable:$true] %s45_s1 }
   0x7   :  { %s19_s29 = sshll.u32 %s398_s28, 4  ;;  %s399_s0 = smov [#allocation7]   ;;  %s20_s29 = int_to_ptr.vmem [resolvable:$true] %s19_s29 }
   0x8   :  { %25 = dma.hbm_to_vmem [thread:$0]  %s18_s25, 256, %s20_s29, [#allocation3], %s396_s26, %s396_s26, %s397_s27  }
   0x9   :  { %s47_s7 = sshll.u32 %s399_s0, 4  ;;  %s48_s7 = int_to_ptr.vmem [resolvable:$true] %s47_s7 }
   0xa   :  { %53 = dma.hbm_to_vmem [thread:$0]  %s46_s1, 2048, %s48_s7, [#allocation6], %s396_s26, %s396_s26, %s397_s27  }
   0xb   :  { %389 = dma.done.wait [#allocation3], 256  }
   0xc   :  { %390 = vsyncadd [#allocation3], 4294967040 }
   0xd   :  { %391 = dma.done.wait [#allocation6], 2560  }
   0xe   :  { %392 = vsyncadd [#allocation6], 4294964736  ;;  %v73_v0 = vld [vmem:[#allocation5 + $0x18] sm:$0xff]  ;;  %v72_v1 = vld [vmem:[#allocation5 + $0x10] sm:$0xff]  ;;  %vm78_vm0 = vcmask 261120   ;;  %s400_s10 = smov [#allocation8]  }
   0xf   :  { %97 = vmatpush.msra.mxu0 %v73_v0  ;;  %v71_v2 = vld [vmem:[#allocation5 + $0x8] sm:$0xff]  ;;  %v70_v3 = vld [vmem:[#allocation5] sm:$0xff]  ;;  %v68_v4 = vld [vmem:[#allocation2] sm:$0xff]  ;;  %s245_s11 = sshll.u32 %s400_s10, 4  ;;  %s247_s14 = sshll.u32 %s496_s5, 4  ;;  %s246_s11 = int_to_ptr.vmem [resolvable:$true] %s245_s11  ;;  %s248_s14 = int_to_ptr.hbm [resolvable:$true] %s247_s14 }
  0x10   :  { %v69_v5 = vld [vmem:[#allocation2 + $0x8] sm:$0xff]  ;;  %v210_v7 = vld [vmem:[#allocation7 + $0x70] sm:$0xff]  ;;  %v209_v8 = vld [vmem:[#allocation7 + $0x68] sm:$0xff] }
  0x11   :  { %98 = vmatpush.msra.mxu0 %v72_v1  ;;  %v211_v6 = vld [vmem:[#allocation7 + $0x78] sm:$0xff]  ;;  %v208_v9 = vld [vmem:[#allocation7 + $0x60] sm:$0xff]  ;;  %v287_v10 = vld [vmem:[%s493_s2] ss:$0 sm:$0xff] }
  0x12   :  { %216 = vmatpush.msra.mxu1 %v211_v6  ;;  %265 = vmatpush.msra.mxu2 %v211_v6  ;;  %v207_v11 = vld [vmem:[#allocation7 + $0x58] sm:$0xff]  ;;  %v206_v13 = vld [vmem:[#allocation7 + $0x50] sm:$0xff]  ;;  %v205_v15 = vld [vmem:[#allocation7 + $0x48] sm:$0xff] }
  0x13   :  { %99 = vmatpush.msra.mxu0 %v71_v2  ;;  %v204_v17 = vld [vmem:[#allocation7 + $0x40] sm:$0xff]  ;;  %v203_v19 = vld [vmem:[#allocation7 + $0x38] sm:$0xff]  ;;  %v202_v20 = vld [vmem:[#allocation7 + $0x30] sm:$0xff] }
  0x14   :  { %217 = vmatpush.msra.mxu1 %v210_v7  ;;  %266 = vmatpush.msra.mxu2 %v210_v7  ;;  %v201_v23 = vld [vmem:[#allocation7 + $0x28] sm:$0xff]  ;;  %v200_v27 = vld [vmem:[#allocation7 + $0x20] sm:$0xff]  ;;  %v199_v30 = vld [vmem:[#allocation7 + $0x18] sm:$0xff] }
  0x15   :  { %100 = vmatpush.msra.mxu0 %v70_v3  ;;  %v198_v34 = vld [vmem:[#allocation7 + $0x10] sm:$0xff]  ;;  %v197_v37 = vld [vmem:[#allocation7 + $0x8] sm:$0xff]  ;;  %v196_v42 = vld [vmem:[#allocation7] sm:$0xff] }
  0x16   :  { %261 = vmatmul.msk.f32.vlgmr.msra.gmra.mxu0 %vm78_vm0, %v68_v4  ;;  %218 = vmatpush.msra.mxu1 %v209_v8 }
  0x17   :  { %267 = vmatpush.msra.mxu2 %v209_v8 }
  0x18   :  { %219 = vmatpush.msra.mxu1 %v208_v9 }
  0x19   :  { %268 = vmatpush.msra.mxu2 %v208_v9 }
  0x1a   :  { %220 = vmatpush.msra.mxu1 %v207_v11 }
  0x1b   :  { %269 = vmatpush.msra.mxu2 %v207_v11 }
  0x1c   :  { %221 = vmatpush.msra.mxu1 %v206_v13 }
  0x1d   :  { %270 = vmatpush.msra.mxu2 %v206_v13 }
  0x1e   :  { %262 = vmatmul.msk.f32.gmra.mxu0 %vm78_vm0, %v69_v5  ;;  %222 = vmatpush.msra.mxu1 %v205_v15 }
  0x1f   :  { %271 = vmatpush.msra.mxu2 %v205_v15 }
  0x20   :  { %223 = vmatpush.msra.mxu1 %v204_v17 }
  0x21   :  { %272 = vmatpush.msra.mxu2 %v204_v17 }
  0x22   :  { %224 = vmatpush.msra.mxu1 %v203_v19 }
  0x23   :  { %273 = vmatpush.msra.mxu2 %v203_v19 }
  0x24   :  { %225 = vmatpush.msra.mxu1 %v202_v20 }
  0x25   :  { %274 = vmatpush.msra.mxu2 %v202_v20 }
  0x26   :  { %226 = vmatpush.msra.mxu1 %v201_v23 }
  0x27   :  { %275 = vmatpush.msra.mxu2 %v201_v23 }
  0x28   :  { %227 = vmatpush.msra.mxu1 %v200_v27 }
  0x29   :  { %276 = vmatpush.msra.mxu2 %v200_v27 }
  0x2a   :  { %228 = vmatpush.msra.mxu1 %v199_v30 }
  0x2b   :  { %277 = vmatpush.msra.mxu2 %v199_v30 }
  0x2c   :  { %229 = vmatpush.msra.mxu1 %v198_v34 }
  0x2d   :  { %278 = vmatpush.msra.mxu2 %v198_v34 }
  0x2e   :  { %230 = vmatpush.msra.mxu1 %v197_v37 }
  0x2f   :  { %279 = vmatpush.msra.mxu2 %v197_v37 }
  0x30   :  { %231 = vmatpush.msra.mxu1 %v196_v42 }
  0x31   :  { %280 = vmatpush.msra.mxu2 %v196_v42 }
  0x93   :  { %v102_v12 = vpop.f32.mrf.mxu0 }
  0x94   :  { %v452_v14 = vadd.f32 %v287_v10, %v102_v12 }
  0x96   :  { %v455_v16 = vmul.f32 0.70710677, %v452_v14 }
  0x98   :  { %v112_v18 = vmul.f32 %v455_v16, %v455_v16 }
  0x9a   :  { %v459_v21 = vmin.f32 %v112_v18, 16.0 }
  0x9b   :  { %v105_v22 = vpop.f32.mrf.mxu0 }
  0x9c   :  { %v114_v24 = vmul.f32 2.1237322e-06, %v459_v21  ;;  %v462_v25 = vadd.f32 %v287_v10, %v105_v22  ;;  %v125_v26 = vmul.f32 3.8918573e-05, %v459_v21 }
  0x9e   :  { %v115_v28 = vadd.f32 0.00028619796, %v114_v24  ;;  %v466_v29 = vmul.f32 0.70710677, %v462_v25  ;;  %v126_v31 = vadd.f32 0.001143296, %v125_v26 }
  0xa0   :  { %v116_v32 = vmul.f32 %v115_v28, %v459_v21  ;;  %v152_v33 = vmul.f32 %v466_v29, %v466_v29  ;;  %v127_v35 = vmul.f32 %v126_v31, %v459_v21 }
  0xa2   :  { %v153_v36 = vmin.f32 %v152_v33, 16.0  ;;  %v128_v38 = vadd.f32 0.014752088, %v127_v35  ;;  %v117_v39 = vadd.f32 0.0036580483, %v116_v32  ;;  %v108_v33 = vmul.f32 0.5, %v452_v14 }
  0xa3   :  { %v288_v14 = vld [vmem:[%s495_s4] ss:$0 sm:$0xff] }
  0xa4   :  { %v154_v40 = vmul.f32 2.1237322e-06, %v153_v36  ;;  %v165_v41 = vmul.f32 3.8918573e-05, %v153_v36  ;;  %v129_v43 = vmul.f32 %v128_v38, %v459_v21  ;;  %v118_v47 = vmul.f32 %v117_v39, %v459_v21 }
  0xa6   :  { %v155_v44 = vadd.f32 0.00028619796, %v154_v40  ;;  %v166_v45 = vadd.f32 0.001143296, %v165_v41  ;;  %v130_v46 = vadd.f32 0.112945676, %v129_v43 }
  0xa7   :  { %v119_v54 = vadd.f32 0.05243302, %v118_v47  ;;  %v109_v41 = vmul.f32 0.5, %v462_v25 }
  0xa8   :  { %v156_v48 = vmul.f32 %v155_v44, %v153_v36  ;;  %v167_v49 = vmul.f32 %v166_v45, %v153_v36  ;;  %v131_v50 = vmul.f32 %v130_v46, %v459_v21 }
  0xa9   :  { %v120_v60 = vmul.f32 %v119_v54, %v459_v21 }
  0xaa   :  { %v168_v51 = vadd.f32 0.014752088, %v167_v49  ;;  %v157_v52 = vadd.f32 0.0036580483, %v156_v48  ;;  %v132_v53 = vadd.f32 0.4994258, %v131_v50 }
  0xab   :  { %v121_v0 = vadd.f32 0.18741608, %v120_v60 }
  0xac   :  { %v169_v55 = vmul.f32 %v168_v51, %v153_v36  ;;  %v133_v56 = vmul.f32 %v132_v53, %v459_v21  ;;  %v158_v58 = vmul.f32 %v157_v52, %v153_v36 }
  0xad   :  { %v122_v5 = vmul.f32 %v121_v0, %v459_v21 }
  0xae   :  { %v170_v57 = vadd.f32 0.112945676, %v169_v55  ;;  %v134_v59 = vadd.f32 1.0, %v133_v56  ;;  %v159_v63 = vadd.f32 0.05243302, %v158_v58 }
  0xaf   :  { %v123_v10 = vadd.f32 1.1283791, %v122_v5 }
  0xb0   :  { %v171_v61 = vmul.f32 %v170_v57, %v153_v36  ;;  %289 = vrcp.f32 %v134_v59  ;;  %v160_v4 = vmul.f32 %v159_v63, %v153_v36  ;;  %v146_v9 = vand.u32 2147483648, %v134_v59 }
  0xb1   :  { %v144_v12 = vand.u32 2147483647, %v134_v59  ;;  %vm140_vm2 = vweird.f32 %v134_v59  ;;  %v124_v20 = vmul.f32 %v123_v10, %v455_v16 }
  0xb2   :  { %v172_v62 = vadd.f32 0.4994258, %v171_v61  ;;  %v161_v8 = vadd.f32 0.18741608, %v160_v4  ;;  %v147_v18 = vor.u32 1.1754944e-38, %v146_v9 }
  0xb3   :  { %vm145_vm4 = vcmp.eq.f32.partialorder %v144_v12, 8.507059e+37 }
  0xb4   :  { %v173_v1 = vmul.f32 %v172_v62, %v153_v36  ;;  %v162_v17 = vmul.f32 %v161_v8, %v153_v36 }
  0xb6   :  { %v174_v2 = vadd.f32 1.0, %v173_v1  ;;  %v290_v3 = vpop.eup %289  ;;  %v163_v27 = vadd.f32 1.1283791, %v162_v17 }
  0xb7   :  { %v136_v6 = vmul.f32 %v290_v3, %v134_v59  ;;  %vm141_vm1 = vweird.f32 %v290_v3 }
  0xb8   :  { %291 = vrcp.f32 %v174_v2  ;;  %vm142_vm3 = vmor %vm140_vm2, %vm141_vm1  ;;  %v186_v26 = vand.u32 2147483648, %v174_v2  ;;  %v184_v30 = vand.u32 2147483647, %v174_v2  ;;  %vm180_vm6 = vweird.f32 %v174_v2 }
  0xb9   :  { %v137_v7 = vsub.f32 1.0, %v136_v6  ;;  %v164_v16 = vmul.f32 %v163_v27, %v466_v29 }
  0xba   :  { %v187_v35 = vor.u32 1.1754944e-38, %v186_v26  ;;  %vm185_vm8 = vcmp.eq.f32.partialorder %v184_v30, 8.507059e+37 }
  0xbb   :  { %v138_v11 = vmul.f32 %v290_v3, %v137_v7 }
  0xbd   :  { %v139_v15 = vadd.f32 %v290_v3, %v138_v11 }
  0xbe   :  { %v292_v13 = vpop.eup %291 }
  0xbf   :  { %v176_v19 = vmul.f32 %v292_v13, %v174_v2  ;;  %v143_v22 = vsel %vm142_vm3, %v290_v3, %v139_v15  ;;  %vm181_vm5 = vweird.f32 %v292_v13 }
  0xc0   :  { %v148_v21 = vsel %vm145_vm4, %v147_v18, %v143_v22  ;;  %vm182_vm7 = vmor %vm180_vm6, %vm181_vm5 }
  0xc1   :  { %v177_v23 = vsub.f32 1.0, %v176_v19  ;;  %v149_v24 = vmul.f32 %v148_v21, %v124_v20 }
  0xc3   :  { %v178_v28 = vmul.f32 %v292_v13, %v177_v23  ;;  %v263_v31 = vclamps-f32 %v149_v24, 1.0 }
  0xc5   :  { %v179_v32 = vadd.f32 %v292_v13, %v178_v28  ;;  %v192_v34 = vadd.f32 1.0, %v263_v31 }
  0xc7   :  { %v183_v36 = vsel %vm182_vm7, %v292_v13, %v179_v32  ;;  %v194_v37 = vmul.f32 %v192_v34, %v108_v33 }
  0xc8   :  { %v188_v38 = vsel %vm185_vm8, %v187_v35, %v183_v36 }
  0xc9   :  { %v189_v39 = vmul.f32 %v188_v38, %v164_v16  ;;  %232 = vmatmul.f32.vlgmr.msra.gmra.mxu1 %v194_v37 }
  0xcb   :  { %v264_v40 = vclamps-f32 %v189_v39, 1.0 }
  0xcd   :  { %v193_v42 = vadd.f32 1.0, %v264_v40 }
  0xcf   :  { %v195_v43 = vmul.f32 %v193_v42, %v109_v41 }
  0xd1   :  { %235 = vmatmul.f32.vlgmr.msra.gmra.mxu2 %v195_v43 }
 0x146   :  { %v233_v44 = vpop.f32.mrf.mxu1 }
 0x147   :  { %v234_v45 = vadd.f32 %v288_v14, %v233_v44 }
 0x149   :  { %239 = vst [vmem:[#allocation8] sm:$0xff] %v234_v45 }
 0x154   :  { %v236_v29 = vpop.f32.mrf.mxu2 }
 0x155   :  { %v237_v46 = vadd.f32 %v288_v14, %v236_v29 }
 0x157   :  { %240 = vst [vmem:[#allocation8 + $0x8] sm:$0xff] %v237_v46 }
 0x158   :  { %253 = dma.vmem_to_hbm [thread:$0]  %s246_s11, 256, %s248_s14, [#allocation4], %s396_s26, %s396_s26, %s397_s27  }
 0x159   :  { %393 = dma.done.wait [#allocation4], 256  }
 0x15a   :  { %394 = vsyncadd [#allocation4], 4294967040 }
 0x15b   :  { %258 = vsyncpa [#allocation3], 1 }
 0x15c   :  { %259 = vsyncpa [#allocation6], 1 }
 0x15d   :  { %260 = vsyncpa [#allocation4], 1 }

</bundles_post_ra>
